<compile_context>
chip_gen: v7x
topology: tpu7x:2x2x1
jax: 0.10.0
libtpu: 0.0.40
codegen_flags: <defaults>
</compile_context>

<pallas_src>
import jax
import jax.numpy as jnp
from jax.experimental import pallas as pl
from jax.experimental.pallas import tpu as pltpu  # noqa: F401  (TPU backend)

B = 2                  # logical batch (matches the PyTorch example usage)
C, H, W = 4, 16, 16
D_IN = C * H * W       # 1024
HID = 128
LAT = 32

BP = 8                 # batch padded to f32 sublane tile
ENC_OUT = 128          # fused encoder head width: mu(32) | logvar(32) | zero-pad(64)
DEC_OUT = 2 * D_IN     # fused decoder head width: recon(1024) | uncertainty(1024)


def vae_forward_kernel(
    x_ref, eps_ref,
    w1_ref, b1_ref, wh_ref, bh_ref,
    w2_ref, b2_ref, wd_ref, bd_ref,
    small_ref, dec_ref,
):
    x = x_ref[...]                                             # (BP, D_IN) f32

    # ---------------- encoder ----------------
    # bf16 operands on the MXU, f32 accumulate; elementwise in f32.
    h = jnp.dot(x.astype(jnp.bfloat16), w1_ref[...],
                preferred_element_type=jnp.float32) + b1_ref[...]
    h = jnp.maximum(h, 0.0)                                    # (BP, HID) f32

    # fused heads: one (HID, 128) matmul -> [mu | logvar | pad]
    heads = jnp.dot(h.astype(jnp.bfloat16), wh_ref[...],
                    preferred_element_type=jnp.float32) + bh_ref[...]
    mu = heads[:, :LAT]                                        # (BP, LAT)
    logvar = heads[:, LAT:2 * LAT]                             # (BP, LAT)

    # ------------- reparameterise -------------
    # std = exp(0.5 * logvar); z = mu + std * eps  (== Normal(mu, std).rsample())
    z = mu + jnp.exp(0.5 * logvar) * eps_ref[...]              # (BP, LAT) f32

    # pack small outputs into one lane-dense 128-wide slab: mu | logvar | z | 0
    small_ref[...] = jnp.concatenate(
        [mu, logvar, z, jnp.zeros((BP, ENC_OUT - 3 * LAT), jnp.float32)],
        axis=-1,
    )

    # ---------------- decoder ----------------
    hd = jnp.dot(z.astype(jnp.bfloat16), w2_ref[...],
                 preferred_element_type=jnp.float32) + b2_ref[...]
    hd = jnp.maximum(hd, 0.0)                                  # (BP, HID) f32

    # fused heads: one (HID, 2048) matmul -> [recon | uncertainty], single dense store
    dec_ref[...] = jnp.dot(hd.astype(jnp.bfloat16), wd_ref[...],
                           preferred_element_type=jnp.float32) + bd_ref[...]


def init_params(key):
    ks = jax.random.split(key, 6)
    scale = 0.02
    w1 = scale * jax.random.normal(ks[0], (D_IN, HID), jnp.float32)
    wmu = scale * jax.random.normal(ks[1], (HID, LAT), jnp.float32)
    wlv = scale * jax.random.normal(ks[2], (HID, LAT), jnp.float32)
    w2 = scale * jax.random.normal(ks[3], (LAT, HID), jnp.float32)
    wrec = scale * jax.random.normal(ks[4], (HID, D_IN), jnp.float32)
    wunc = scale * jax.random.normal(ks[5], (HID, D_IN), jnp.float32)

    # fused + zero-padded encoder head: columns [0:32)=mu, [32:64)=logvar, rest 0
    wh = jnp.zeros((HID, ENC_OUT), jnp.float32)
    wh = wh.at[:, :LAT].set(wmu).at[:, LAT:2 * LAT].set(wlv)
    # fused decoder head: columns [0:1024)=recon, [1024:2048)=uncertainty
    wd = jnp.concatenate([wrec, wunc], axis=-1)

    return {
        "w1": w1.astype(jnp.bfloat16),
        "b1": jnp.zeros((1, HID), jnp.float32),
        "wh": wh.astype(jnp.bfloat16),
        "bh": jnp.zeros((1, ENC_OUT), jnp.float32),
        "w2": w2.astype(jnp.bfloat16),
        "b2": jnp.zeros((1, HID), jnp.float32),
        "wd": wd.astype(jnp.bfloat16),
        "bd": jnp.zeros((1, DEC_OUT), jnp.float32),
    }


@jax.jit
def vae_forward(x, eps, params):
    b = x.shape[0]
    x_flat = x.reshape(b, D_IN)
    pad = BP - b
    x_p = jnp.pad(x_flat, ((0, pad), (0, 0)))
    eps_p = jnp.pad(eps, ((0, pad), (0, 0)))

    small, dec = pl.pallas_call(
        vae_forward_kernel,
        out_shape=(
            jax.ShapeDtypeStruct((BP, ENC_OUT), jnp.float32),   # mu | logvar | z | pad
            jax.ShapeDtypeStruct((BP, DEC_OUT), jnp.float32),   # recon | uncertainty
        ),
    )(
        x_p, eps_p,
        params["w1"], params["b1"], params["wh"], params["bh"],
        params["w2"], params["b2"], params["wd"], params["bd"],
    )

    mu = small[:b, :LAT]
    logvar = small[:b, LAT:2 * LAT]
    z = small[:b, 2 * LAT:3 * LAT]
    recon = dec[:b, :D_IN].reshape(b, C, H, W)
    uncertainty = dec[:b, D_IN:].reshape(b, C, H, W)
    return mu, logvar, z, recon, uncertainty


def vae_forward_ref(x, eps, params):
    """Pure-JAX reference with identical bf16-weight / f32-accumulate semantics."""
    x_flat = x.reshape(x.shape[0], D_IN)
    h = jnp.maximum(
        jnp.dot(x_flat.astype(jnp.bfloat16), params["w1"],
                preferred_element_type=jnp.float32) + params["b1"], 0.0)
    heads = jnp.dot(h.astype(jnp.bfloat16), params["wh"],
                    preferred_element_type=jnp.float32) + params["bh"]
    mu, logvar = heads[:, :LAT], heads[:, LAT:2 * LAT]
    z = mu + jnp.exp(0.5 * logvar) * eps
    hd = jnp.maximum(
        jnp.dot(z.astype(jnp.bfloat16), params["w2"],
                preferred_element_type=jnp.float32) + params["b2"], 0.0)
    dec = jnp.dot(hd.astype(jnp.bfloat16), params["wd"],
                  preferred_element_type=jnp.float32) + params["bd"]
    recon = dec[:, :D_IN].reshape(x.shape[0], C, H, W)
    unc = dec[:, D_IN:].reshape(x.shape[0], C, H, W)
    return mu, logvar, z, recon, unc


if __name__ == "__main__":
    key = jax.random.PRNGKey(0)
    k_x, k_eps, k_p = jax.random.split(key, 3)

    x = jax.random.normal(k_x, (B, C, H, W), jnp.float32)      # NCHW input
    eps = jax.random.normal(k_eps, (B, LAT), jnp.float32)      # reparam noise
    params = init_params(k_p)

    mu, logvar, z, recon, uncertainty = vae_forward(x, eps, params)
    jax.block_until_ready((mu, logvar, z, recon, uncertainty))

    assert mu.shape == (B, LAT)
    assert logvar.shape == (B, LAT)
    assert z.shape == (B, LAT)
    assert recon.shape == (B, C, H, W)
    assert uncertainty.shape == (B, C, H, W)

    # correctness check against pure-JAX reference (same bf16/f32 semantics)
    r_mu, r_lv, r_z, r_rec, r_unc = vae_forward_ref(x, eps, params)
    assert jnp.allclose(mu, r_mu, atol=1e-2, rtol=1e-2)
    assert jnp.allclose(logvar, r_lv, atol=1e-2, rtol=1e-2)
    assert jnp.allclose(z, r_z, atol=1e-2, rtol=1e-2)
    assert jnp.allclose(recon, r_rec, atol=1e-2, rtol=1e-2)
    assert jnp.allclose(uncertainty, r_unc, atol=1e-2, rtol=1e-2)

    print("KERNEL_OK")
</pallas_src>

<mosaic_0001>
module attributes {stable_mosaic.version = 11 : i64} {
  func.func @vae_forward_kernel(%arg0: memref<8x1024xf32, #tpu.memory_space<vmem>>, %arg1: memref<8x32xf32, #tpu.memory_space<vmem>>, %arg2: memref<1024x128xbf16, #tpu.memory_space<vmem>>, %arg3: memref<1x128xf32, #tpu.memory_space<vmem>>, %arg4: memref<128x128xbf16, #tpu.memory_space<vmem>>, %arg5: memref<1x128xf32, #tpu.memory_space<vmem>>, %arg6: memref<32x128xbf16, #tpu.memory_space<vmem>>, %arg7: memref<1x128xf32, #tpu.memory_space<vmem>>, %arg8: memref<128x2048xbf16, #tpu.memory_space<vmem>>, %arg9: memref<1x2048xf32, #tpu.memory_space<vmem>>, %arg10: memref<8x128xf32, #tpu.memory_space<vmem>>, %arg11: memref<8x2048xf32, #tpu.memory_space<vmem>>) attributes {dimension_semantics = [], scalar_prefetch = 0 : i64, scratch_operands = 0 : i64, tpu.core_type = #tpu.core_type<tc>} {
    %c0 = arith.constant 0 : index
    %c0_0 = arith.constant 0 : index
    %0 = vector.load %arg0[%c0, %c0_0] : memref<8x1024xf32, #tpu.memory_space<vmem>>, vector<8x1024xf32>
    %1 = arith.truncf %0 : vector<8x1024xf32> to vector<8x1024xbf16>
    %c0_1 = arith.constant 0 : index
    %c0_2 = arith.constant 0 : index
    %2 = vector.load %arg2[%c0_1, %c0_2] : memref<1024x128xbf16, #tpu.memory_space<vmem>>, vector<1024x128xbf16>
    %cst = arith.constant dense<0.000000e+00> : vector<8x128xf32>
    %3 = tpu.matmul %1, %2, %cst {dimension_numbers = #tpu.dot_dimension_numbers<[1], [0], [0], [1], [0, 0, 1, 1], [], []>} : vector<8x1024xbf16>, vector<1024x128xbf16>, vector<8x128xf32> -> vector<8x128xf32>
    %c0_3 = arith.constant 0 : index
    %c0_4 = arith.constant 0 : index
    %4 = vector.load %arg3[%c0_3, %c0_4] : memref<1x128xf32, #tpu.memory_space<vmem>>, vector<1x128xf32>
    %5 = vector.broadcast %4 : vector<1x128xf32> to vector<8x128xf32>
    %6 = arith.addf %3, %5 : vector<8x128xf32>
    %cst_5 = arith.constant 0.000000e+00 : f32
    %7 = vector.broadcast %cst_5 : f32 to vector<8x128xf32>
    %8 = arith.maximumf %6, %7 : vector<8x128xf32>
    %9 = arith.truncf %8 : vector<8x128xf32> to vector<8x128xbf16>
    %c0_6 = arith.constant 0 : index
    %c0_7 = arith.constant 0 : index
    %10 = vector.load %arg4[%c0_6, %c0_7] : memref<128x128xbf16, #tpu.memory_space<vmem>>, vector<128x128xbf16>
    %cst_8 = arith.constant dense<0.000000e+00> : vector<8x128xf32>
    %11 = tpu.matmul %9, %10, %cst_8 {dimension_numbers = #tpu.dot_dimension_numbers<[1], [0], [0], [1], [0, 0, 1, 1], [], []>} : vector<8x128xbf16>, vector<128x128xbf16>, vector<8x128xf32> -> vector<8x128xf32>
    %c0_9 = arith.constant 0 : index
    %c0_10 = arith.constant 0 : index
    %12 = vector.load %arg5[%c0_9, %c0_10] : memref<1x128xf32, #tpu.memory_space<vmem>>, vector<1x128xf32>
    %13 = vector.broadcast %12 : vector<1x128xf32> to vector<8x128xf32>
    %14 = arith.addf %11, %13 : vector<8x128xf32>
    %15 = vector.extract_strided_slice %14 {offsets = [0, 0], sizes = [8, 32], strides = [1, 1]} : vector<8x128xf32> to vector<8x32xf32>
    %16 = vector.extract_strided_slice %14 {offsets = [0, 32], sizes = [8, 32], strides = [1, 1]} : vector<8x128xf32> to vector<8x32xf32>
    %cst_11 = arith.constant 5.000000e-01 : f32
    %17 = vector.broadcast %cst_11 : f32 to vector<8x32xf32>
    %18 = arith.mulf %17, %16 : vector<8x32xf32>
    %19 = math.exp %18 : vector<8x32xf32>
    %c0_12 = arith.constant 0 : index
    %c0_13 = arith.constant 0 : index
    %20 = vector.load %arg1[%c0_12, %c0_13] : memref<8x32xf32, #tpu.memory_space<vmem>>, vector<8x32xf32>
    %21 = arith.mulf %19, %20 : vector<8x32xf32>
    %22 = arith.addf %15, %21 : vector<8x32xf32>
    %cst_14 = arith.constant 0.000000e+00 : f32
    %23 = vector.broadcast %cst_14 : f32 to vector<8x32xf32>
    %24 = tpu.concatenate %15, %16, %22, %23 in 1 : vector<8x32xf32>, vector<8x32xf32>, vector<8x32xf32>, vector<8x32xf32> -> vector<8x128xf32>
    %c0_15 = arith.constant 0 : index
    %c0_16 = arith.constant 0 : index
    %25 = vector.load %arg10[%c0_15, %c0_16] : memref<8x128xf32, #tpu.memory_space<vmem>>, vector<8x128xf32>
    tpu.vector_store %arg10[%c0_15, %c0_16], %24 {strides = array<i32>} : memref<8x128xf32, #tpu.memory_space<vmem>>, vector<8x128xf32>,
    %26 = arith.truncf %22 : vector<8x32xf32> to vector<8x32xbf16>
    %c0_17 = arith.constant 0 : index
    %c0_18 = arith.constant 0 : index
    %27 = vector.load %arg6[%c0_17, %c0_18] : memref<32x128xbf16, #tpu.memory_space<vmem>>, vector<32x128xbf16>
    %cst_19 = arith.constant dense<0.000000e+00> : vector<8x128xf32>
    %28 = tpu.matmul %26, %27, %cst_19 {dimension_numbers = #tpu.dot_dimension_numbers<[1], [0], [0], [1], [0, 0, 1, 1], [], []>} : vector<8x32xbf16>, vector<32x128xbf16>, vector<8x128xf32> -> vector<8x128xf32>
    %c0_20 = arith.constant 0 : index
    %c0_21 = arith.constant 0 : index
    %29 = vector.load %arg7[%c0_20, %c0_21] : memref<1x128xf32, #tpu.memory_space<vmem>>, vector<1x128xf32>
    %30 = vector.broadcast %29 : vector<1x128xf32> to vector<8x128xf32>
    %31 = arith.addf %28, %30 : vector<8x128xf32>
    %cst_22 = arith.constant 0.000000e+00 : f32
    %32 = vector.broadcast %cst_22 : f32 to vector<8x128xf32>
    %33 = arith.maximumf %31, %32 : vector<8x128xf32>
    %34 = arith.truncf %33 : vector<8x128xf32> to vector<8x128xbf16>
    %c0_23 = arith.constant 0 : index
    %c0_24 = arith.constant 0 : index
    %35 = vector.load %arg8[%c0_23, %c0_24] : memref<128x2048xbf16, #tpu.memory_space<vmem>>, vector<128x2048xbf16>
    %cst_25 = arith.constant dense<0.000000e+00> : vector<8x2048xf32>
    %36 = tpu.matmul %34, %35, %cst_25 {dimension_numbers = #tpu.dot_dimension_numbers<[1], [0], [0], [1], [0, 0, 1, 1], [], []>} : vector<8x128xbf16>, vector<128x2048xbf16>, vector<8x2048xf32> -> vector<8x2048xf32>
    %c0_26 = arith.constant 0 : index
    %c0_27 = arith.constant 0 : index
    %37 = vector.load %arg9[%c0_26, %c0_27] : memref<1x2048xf32, #tpu.memory_space<vmem>>, vector<1x2048xf32>
    %38 = vector.broadcast %37 : vector<1x2048xf32> to vector<8x2048xf32>
    %39 = arith.addf %36, %38 : vector<8x2048xf32>
    %c0_28 = arith.constant 0 : index
    %c0_29 = arith.constant 0 : index
    %40 = vector.load %arg11[%c0_28, %c0_29] : memref<8x2048xf32, #tpu.memory_space<vmem>>, vector<8x2048xf32>
    tpu.vector_store %arg11[%c0_28, %c0_29], %39 {strides = array<i32>} : memref<8x2048xf32, #tpu.memory_space<vmem>>, vector<8x2048xf32>,
    return
  }
}

</mosaic_0001>

<bundles_post_ra>
// kernel: vae_forward.1
= control target key start
LH: loop header
LB: loop body
LE: loop exit
PB: predicated region body
PF: predicated region fallthrough
CT: control target
= control target key end

     0   :  { %17 = vsyncpa [#allocation3], 0  ;;  %s2895_s0 = inlined_call_operand.vmem [shape: f32[8,1024], index: 0, kind: input, shape index: {}]   ;;  %s2896_s1 = inlined_call_operand.vmem [shape: f32[8,32], index: 1, kind: input, shape index: {}]   ;;  %s2897_s2 = inlined_call_operand.hbm [shape: bf16[1024,128], index: 2, kind: input, shape index: {}]   ;;  %s2898_s3 = inlined_call_operand.vmem [shape: f32[1,128], index: 3, kind: input, shape index: {}]   ;;  %s2899_s4 = inlined_call_operand.vmem [shape: bf16[128,128], index: 4, kind: input, shape index: {}]   ;;  %s2900_s5 = inlined_call_operand.vmem [shape: f32[1,128], index: 5, kind: input, shape index: {}]   ;;  %s2901_s6 = inlined_call_operand.vmem [shape: bf16[32,128], index: 6, kind: input, shape index: {}]   ;;  %s2902_s7 = inlined_call_operand.vmem [shape: f32[1,128], index: 7, kind: input, shape index: {}]   ;;  %s2903_s8 = inlined_call_operand.hbm [shape: bf16[128,2048], index: 8, kind: input, shape index: {}]   ;;  %s2904_s9 = inlined_call_operand.vmem [shape: f32[1,2048], index: 9, kind: input, shape index: {}]   ;;  %s2905_s10 = inlined_call_operand.vmem [shape: f32[8,128], index: 10, kind: output, shape index: {0}]   ;;  %s2906_s11 = inlined_call_operand.vmem [shape: f32[8,2048], index: 11, kind: output, shape index: {1}]  }
   0x1   :  { %18 = vsyncpa [#allocation5], 0  ;;  %s2641_s17 = smov [#allocation2]   ;;  %s2593_s21 = scalar_lea.hbm %s2897_s2, 8192 }
   0x2   :  { %s28_s18 = sshll.u32 %s2641_s17, 4  ;;  %p2594_p0 = scmp.ne.s32.totalorder %s2897_s2, %s2593_s21  ;;  %s29_s18 = int_to_ptr.vmem [resolvable:$true] %s28_s18 }
   0x3   :  { %p2597_p1 = scmp.lt.u32.totalorder %s2593_s21, %s2897_s2 }
   0x5   :  { %p2599_p2 = pnand %p2597_p1, %p2594_p0 }
   0x7   :  { %2602 = shalt.err (!%p2599_p2)
}
   0x8   :  { %s2603_s26 = scalar_lea.vmem %s29_s18, 8192  ;;  %p2608_p4 = scmp.lt.s32.totalorder %s29_s18, %s29_s18 }
   0x9   :  { %p2604_p3 = scmp.ne.s32.totalorder %s29_s18, %s2603_s26  ;;  %p2609_p5 = scmp.lt.s32.totalorder %s2603_s26, %s2603_s26 }
   0xb   :  { %p2610_p6 = por %p2609_p5, %p2608_p4 }
   0xd   :  { %p2611_p7 = pnand %p2610_p6, %p2604_p3 }
   0xf   :  { %2614 = shalt.err (!%p2611_p7)
}
  0x10   :  { %s2642_s27 = smov 64   ;;  %s2643_s28 = smov 4  }
  0x11   :  { %34 = dma.hbm_to_vmem [thread:$0]  %s2897_s2, 8192, %s29_s18, [#allocation3], %s2642_s27, %s2642_s27, %s2643_s28  }
  0x12   :  { %s2644_s12 = smov [#allocation4]   ;;  %s2615_s16 = scalar_lea.hbm %s2903_s8, 16384 }
  0x13   :  { %s50_s13 = sshll.u32 %s2644_s12, 4  ;;  %p2616_p8 = scmp.ne.s32.totalorder %s2903_s8, %s2615_s16  ;;  %s51_s13 = int_to_ptr.vmem [resolvable:$true] %s50_s13 }
  0x14   :  { %p2619_p9 = scmp.lt.u32.totalorder %s2615_s16, %s2903_s8 }
  0x16   :  { %p2621_p10 = pnand %p2619_p9, %p2616_p8 }
  0x18   :  { %2624 = shalt.err (!%p2621_p10)
}
  0x19   :  { %s2625_s22 = scalar_lea.vmem %s51_s13, 16384  ;;  %p2630_p12 = scmp.lt.s32.totalorder %s51_s13, %s51_s13 }
  0x1a   :  { %p2626_p11 = scmp.ne.s32.totalorder %s51_s13, %s2625_s22  ;;  %p2631_p13 = scmp.lt.s32.totalorder %s2625_s22, %s2625_s22 }
  0x1c   :  { %p2632_p0 = por %p2631_p13, %p2630_p12 }
  0x1e   :  { %p2633_p1 = pnand %p2632_p0, %p2626_p11 }
  0x20   :  { %2636 = shalt.err (!%p2633_p1)
}
  0x21   :  { %s2645_s2 = smov 1024  }
  0x22   :  { %56 = dma.hbm_to_vmem [thread:$0]  %s2903_s8, 16384, %s51_s13, [#allocation5], %s2645_s2, %s2645_s2, %s2642_s27  }
  0x23   :  { %2637 = dma.done.wait [#allocation3], 8192  }
  0x24   :  { %2638 = vsyncadd [#allocation3], 4294959104 }
  0x25   :  { %2639 = dma.done.wait [#allocation5], 16384  }
  0x26   :  { %2640 = vsyncadd [#allocation5], 4294950912  ;;  %v2517_v0 = vld [vmem:[#allocation2 + $0x40] sm:$0xff]   ;;  %v2521_v4 = vld [vmem:[#allocation2 + $0x48] sm:$0xff]   ;;  %vm2647_vm0 = vmmov 0   ;;  %s2648_s19 = smov 32  }
  0x27   :  { %v2518_v1 = vld [vmem:[#allocation2 + $0xc0] sm:$0xff]   ;;  %2379 = vmatprep.subr.bf16.mxu0 %v2517_v0  ;;  %v2522_v5 = vld [vmem:[#allocation2 + $0xc8] sm:$0xff]   ;;  %v2525_v8 = vld [vmem:[#allocation2 + $0x50] sm:$0xff]   ;;  %s2649_s23 = smov 96   ;;  %vm921_vm1 = vcmask 261120   ;;  %vm892_vm2 = vcmask 523264  }
  0x28   :  { %v2519_v2 = vld [vmem:[#allocation2] sm:$0xff]   ;;  %2401 = vmatprep.subr.bf16.mxu1 %v2518_v1  ;;  %v2523_v6 = vld [vmem:[#allocation2 + $0x8] sm:$0xff]   ;;  %v2526_v9 = vld [vmem:[#allocation2 + $0xd0] sm:$0xff]   ;;  %vm894_vm3 = vcmask 785408  }
  0x29   :  { %v2520_v3 = vld [vmem:[#allocation2 + $0x80] sm:$0xff]   ;;  %2380 = vmatpush3.bf16.msra.mxu0 %v2519_v2  ;;  %v2524_v7 = vld [vmem:[#allocation2 + $0x88] sm:$0xff]   ;;  %v2527_v10 = vld [vmem:[#allocation2 + $0x10] sm:$0xff]  }
  0x2a   :  { %2402 = vmatpush3.bf16.msra.mxu1 %v2520_v3  ;;  %2381 = vmatprep.subr.bf16.mxu0 %v2521_v4  ;;  %v2528_v11 = vld [vmem:[#allocation2 + $0x90] sm:$0xff]   ;;  %v2529_v12 = vld [vmem:[#allocation2 + $0x58] sm:$0xff]   ;;  %v2533_v16 = vld [vmem:[#allocation2 + $0x60] sm:$0xff]  }
  0x2b   :  { %2403 = vmatprep.subr.bf16.mxu1 %v2522_v5  ;;  %v2530_v13 = vld [vmem:[#allocation2 + $0xd8] sm:$0xff]   ;;  %v2534_v17 = vld [vmem:[#allocation2 + $0xe0] sm:$0xff]   ;;  %v2537_v20 = vld [vmem:[#allocation2 + $0x68] sm:$0xff]  }
  0x2c   :  { %v2531_v14 = vld [vmem:[#allocation2 + $0x18] sm:$0xff]   ;;  %v2535_v18 = vld [vmem:[#allocation2 + $0x20] sm:$0xff]   ;;  %v2538_v21 = vld [vmem:[#allocation2 + $0xe8] sm:$0xff]  }
  0x2d   :  { %2382 = vmatpush3.bf16.msra.mxu0 %v2523_v6  ;;  %v2532_v15 = vld [vmem:[#allocation2 + $0x98] sm:$0xff]   ;;  %v2536_v19 = vld [vmem:[#allocation2 + $0xa0] sm:$0xff]   ;;  %v2539_v22 = vld [vmem:[#allocation2 + $0x28] sm:$0xff]  }
  0x2e   :  { %2404 = vmatpush3.bf16.msra.mxu1 %v2524_v7  ;;  %2383 = vmatprep.subr.bf16.mxu0 %v2525_v8  ;;  %v2540_v23 = vld [vmem:[#allocation2 + $0xa8] sm:$0xff]   ;;  %v2541_v24 = vld [vmem:[#allocation2 + $0x70] sm:$0xff]   ;;  %v2545_v28 = vld [vmem:[#allocation2 + $0x78] sm:$0xff]  }
  0x2f   :  { %2405 = vmatprep.subr.bf16.mxu1 %v2526_v9  ;;  %v2542_v25 = vld [vmem:[#allocation2 + $0xf0] sm:$0xff]   ;;  %v2546_v29 = vld [vmem:[#allocation2 + $0xf8] sm:$0xff]   ;;  %v67_v32 = vld [vmem:[%s2895_s0 + $0x8] sm:$0xff] }
  0x30   :  { %v2543_v26 = vld [vmem:[#allocation2 + $0x30] sm:$0xff]   ;;  %v2547_v30 = vld [vmem:[#allocation2 + $0x38] sm:$0xff]   ;;  %v66_v34 = vld [vmem:[%s2895_s0] sm:$0xff]  ;;  %v75_v35 = vpack.c.bf16 %v67_v32, %v67_v32 }
  0x31   :  { %2384 = vmatpush3.bf16.msra.mxu0 %v2527_v10  ;;  %v2544_v27 = vld [vmem:[#allocation2 + $0xb0] sm:$0xff]   ;;  %v2548_v31 = vld [vmem:[#allocation2 + $0xb8] sm:$0xff]   ;;  %v74_v37 = vpack.c.bf16 %v66_v34, %v66_v34  ;;  %v2549_v40 = vld [vmem:[#allocation2 + $0x140] sm:$0xff]  }
  0x32   :  { %2406 = vmatpush3.bf16.msra.mxu1 %v2528_v11  ;;  %2385 = vmatprep.subr.bf16.mxu0 %v2529_v12  ;;  %v69_v33 = vld [vmem:[%s2895_s0 + $0x18] sm:$0xff]  ;;  %v68_v38 = vld [vmem:[%s2895_s0 + $0x10] sm:$0xff]  ;;  %v2550_v41 = vld [vmem:[#allocation2 + $0x1c0] sm:$0xff]  }
  0x33   :  { %2407 = vmatprep.subr.bf16.mxu1 %v2530_v13  ;;  %v77_v36 = vpack.c.bf16 %v69_v33, %v69_v33  ;;  %v76_v39 = vpack.c.bf16 %v68_v38, %v68_v38  ;;  %633 = vmatprep.mubr.bf16.mxu0 %v75_v35  ;;  %v2551_v42 = vld [vmem:[#allocation2 + $0x100] sm:$0xff]   ;;  %v2553_v44 = vld [vmem:[#allocation2 + $0x148] sm:$0xff]   ;;  %v2557_v48 = vld [vmem:[#allocation2 + $0x150] sm:$0xff]  }
  0x34   :  { %v2552_v43 = vld [vmem:[#allocation2 + $0x180] sm:$0xff]   ;;  %v2554_v45 = vld [vmem:[#allocation2 + $0x1c8] sm:$0xff]   ;;  %v2558_v49 = vld [vmem:[#allocation2 + $0x1d0] sm:$0xff]  }
  0x35   :  { %2386 = vmatpush3.bf16.msra.mxu0 %v2531_v14  ;;  %673 = vmatprep.mubr.bf16.mxu1 %v77_v36  ;;  %v2555_v46 = vld [vmem:[#allocation2 + $0x108] sm:$0xff]   ;;  %v2559_v50 = vld [vmem:[#allocation2 + $0x110] sm:$0xff]   ;;  %v2561_v52 = vld [vmem:[#allocation2 + $0x158] sm:$0xff]  }
  0x36   :  { %2408 = vmatpush3.bf16.msra.mxu1 %v2532_v15  ;;  %2387 = vmatprep.subr.bf16.mxu0 %v2533_v16  ;;  %v2556_v47 = vld [vmem:[#allocation2 + $0x188] sm:$0xff]   ;;  %v2560_v51 = vld [vmem:[#allocation2 + $0x190] sm:$0xff]   ;;  %v2562_v53 = vld [vmem:[#allocation2 + $0x1d8] sm:$0xff]  }
  0x37   :  { %2409 = vmatprep.subr.bf16.mxu1 %v2534_v17  ;;  %v2563_v54 = vld [vmem:[#allocation2 + $0x118] sm:$0xff]   ;;  %v2565_v56 = vld [vmem:[#allocation2 + $0x160] sm:$0xff]   ;;  %v2569_v60 = vld [vmem:[#allocation2 + $0x168] sm:$0xff]   ;;  %v2646_v17 = vmov 0.0  }
  0x38   :  { %v2564_v55 = vld [vmem:[#allocation2 + $0x198] sm:$0xff]   ;;  %v2566_v57 = vld [vmem:[#allocation2 + $0x1e0] sm:$0xff]   ;;  %v2570_v61 = vld [vmem:[#allocation2 + $0x1e8] sm:$0xff]  }
  0x39   :  { %2388 = vmatpush3.bf16.msra.mxu0 %v2535_v18  ;;  %v2567_v58 = vld [vmem:[#allocation2 + $0x120] sm:$0xff]   ;;  %v2571_v62 = vld [vmem:[#allocation2 + $0x128] sm:$0xff]   ;;  %v2573_v0 = vld [vmem:[#allocation2 + $0x170] sm:$0xff]  }
  0x3a   :  { %2410 = vmatpush3.bf16.msra.mxu1 %v2536_v19  ;;  %2389 = vmatprep.subr.bf16.mxu0 %v2537_v20  ;;  %v2568_v59 = vld [vmem:[#allocation2 + $0x1a0] sm:$0xff]   ;;  %v2572_v63 = vld [vmem:[#allocation2 + $0x1a8] sm:$0xff]   ;;  %v2574_v1 = vld [vmem:[#allocation2 + $0x1f0] sm:$0xff]  }
  0x3b   :  { %2411 = vmatprep.subr.bf16.mxu1 %v2538_v21  ;;  %v2575_v2 = vld [vmem:[#allocation2 + $0x130] sm:$0xff]   ;;  %v2577_v4 = vld [vmem:[#allocation2 + $0x178] sm:$0xff]   ;;  %v71_v8 = vld [vmem:[%s2895_s0 + $0x28] sm:$0xff] }
  0x3c   :  { %v2576_v3 = vld [vmem:[#allocation2 + $0x1b0] sm:$0xff]   ;;  %v2578_v5 = vld [vmem:[#allocation2 + $0x1f8] sm:$0xff]   ;;  %v79_v10 = vpack.c.bf16 %v71_v8, %v71_v8  ;;  %v70_v12 = vld [vmem:[%s2895_s0 + $0x20] sm:$0xff] }
  0x3d   :  { %2390 = vmatpush3.bf16.msra.mxu0 %v2539_v22  ;;  %v2579_v6 = vld [vmem:[#allocation2 + $0x138] sm:$0xff]   ;;  %v72_v13 = vld [vmem:[%s2895_s0 + $0x30] sm:$0xff]  ;;  %v78_v14 = vpack.c.bf16 %v70_v12, %v70_v12  ;;  %v2581_v16 = vld [vmem:[%s2899_s4] sm:$0xff]  }
  0x3e   :  { %2412 = vmatpush3.bf16.msra.mxu1 %v2540_v23  ;;  %2391 = vmatprep.subr.bf16.mxu0 %v2541_v24  ;;  %v2580_v7 = vld [vmem:[#allocation2 + $0x1b8] sm:$0xff]   ;;  %v80_v15 = vpack.c.bf16 %v72_v13, %v72_v13  ;;  %v2582_v18 = vld [vmem:[%s2899_s4 + $0x8] sm:$0xff]   ;;  %v2583_v19 = vld [vmem:[%s2899_s4 + $0x10] sm:$0xff]  }
  0x3f   :  { %2413 = vmatprep.subr.bf16.mxu1 %v2542_v25  ;;  %v73_v9 = vld [vmem:[%s2895_s0 + $0x38] sm:$0xff]  ;;  %v2585_v21 = vld [vmem:[%s2899_s4 + $0x20] sm:$0xff]   ;;  %v2586_v22 = vld [vmem:[%s2899_s4 + $0x28] sm:$0xff]  }
  0x40   :  { %v81_v11 = vpack.c.bf16 %v73_v9, %v73_v9  ;;  %v2584_v20 = vld [vmem:[%s2899_s4 + $0x18] sm:$0xff]   ;;  %v2587_v23 = vld [vmem:[%s2899_s4 + $0x30] sm:$0xff]   ;;  %v877_v25 = vld [vmem:[%s2896_s1] sm:$0xff] }
  0x41   :  { %2392 = vmatpush3.bf16.msra.mxu0 %v2543_v26  ;;  %v2588_v24 = vld [vmem:[%s2899_s4 + $0x38] sm:$0xff]   ;;  %879 = vrot.lane.b32.xlu0 %v877_v25, %s2648_s19  ;;  %v984_v9 = vld [vmem:[#allocation4 + $0x88] sm:$0xff] }
  0x42   :  { %2414 = vmatpush3.bf16.msra.mxu1 %v2544_v27  ;;  %2393 = vmatprep.subr.bf16.mxu0 %v2545_v28  ;;  %v2173_v28 = vld [vmem:[%s2898_s3] ss:$0 sm:$0xff]  ;;  %v1000_v12 = vld [vmem:[#allocation4 + $0x108] sm:$0xff] }
  0x43   :  { %2415 = vmatprep.subr.bf16.mxu1 %v2546_v29  ;;  %v1008_v13 = vld [vmem:[#allocation4 + $0x148] sm:$0xff] }
  0x45   :  { %2394 = vmatpush3.bf16.msra.mxu0 %v2547_v30 }
  0x46   :  { %2416 = vmatpush3.bf16.msra.mxu1 %v2548_v31  ;;  %2423 = vmatprep.subr.bf16.mxu0 %v2549_v40 }
  0x47   :  { %2445 = vmatprep.subr.bf16.mxu1 %v2550_v41 }
  0x48   :  { %634 = vmatmul.mubr.bf16.vlgmr.msra.gmra.mrb[0].mxu0 %v74_v37 }
  0x49   :  { %674 = vmatmul.mubr.bf16.vlgmr.msra.gmra.mrb[0].mxu1 %v76_v39  ;;  %2424 = vmatpush3.bf16.msra.mxu0 %v2551_v42 }
  0x4a   :  { %2446 = vmatpush3.bf16.msra.mxu1 %v2552_v43  ;;  %2425 = vmatprep.subr.bf16.mxu0 %v2553_v44 }
  0x4b   :  { %2447 = vmatprep.subr.bf16.mxu1 %v2554_v45  ;;  %713 = vmatprep.mubr.bf16.mxu0 %v79_v10  ;;  %v992_v10 = vld [vmem:[#allocation4 + $0xc8] sm:$0xff] }
  0x4c   :  { %753 = vmatprep.mubr.bf16.mxu1 %v81_v11  ;;  %v2270_v11 = vcombine.high %v984_v9, %v992_v10 }
  0x4d   :  { %2426 = vmatpush3.bf16.msra.mxu0 %v2555_v46 }
  0x4e   :  { %2448 = vmatpush3.bf16.msra.mxu1 %v2556_v47  ;;  %2427 = vmatprep.subr.bf16.mxu0 %v2557_v48 }
  0x4f   :  { %2449 = vmatprep.subr.bf16.mxu1 %v2558_v49 }
  0x51   :  { %2428 = vmatpush3.bf16.msra.mxu0 %v2559_v50 }
  0x52   :  { %2450 = vmatpush3.bf16.msra.mxu1 %v2560_v51  ;;  %2429 = vmatprep.subr.bf16.mxu0 %v2561_v52 }
  0x53   :  { %2451 = vmatprep.subr.bf16.mxu1 %v2562_v53  ;;  %v2589_v53 = vld [vmem:[%s2901_s6] sm:$0xff]  }
  0x55   :  { %2430 = vmatpush3.bf16.msra.mxu0 %v2563_v54  ;;  %v2238_v54 = vld [vmem:[%s2900_s5] ss:$0 sm:$0xff] }
  0x56   :  { %2452 = vmatpush3.bf16.msra.mxu1 %v2564_v55  ;;  %2431 = vmatprep.subr.bf16.mxu0 %v2565_v56 }
  0x57   :  { %2453 = vmatprep.subr.bf16.mxu1 %v2566_v57 }
  0x59   :  { %2432 = vmatpush3.bf16.msra.mxu0 %v2567_v58 }
  0x5a   :  { %2454 = vmatpush3.bf16.msra.mxu1 %v2568_v59  ;;  %2433 = vmatprep.subr.bf16.mxu0 %v2569_v60 }
  0x5b   :  { %2455 = vmatprep.subr.bf16.mxu1 %v2570_v61 }
  0x5d   :  { %2434 = vmatpush3.bf16.msra.mxu0 %v2571_v62  ;;  %v2590_v62 = vld [vmem:[%s2901_s6 + $0x8] sm:$0xff]  }
  0x5e   :  { %2456 = vmatpush3.bf16.msra.mxu1 %v2572_v63  ;;  %2435 = vmatprep.subr.bf16.mxu0 %v2573_v0 }
  0x5f   :  { %2457 = vmatprep.subr.bf16.mxu1 %v2574_v1 }
  0x61   :  { %2436 = vmatpush3.bf16.msra.mxu0 %v2575_v2  ;;  %v967_v2 = vld [vmem:[#allocation4] sm:$0xff] }
  0x62   :  { %2458 = vmatpush3.bf16.msra.mxu1 %v2576_v3  ;;  %2437 = vmatprep.subr.bf16.mxu0 %v2577_v4  ;;  %v975_v3 = vld [vmem:[#allocation4 + $0x40] sm:$0xff]  ;;  %v968_v4 = vld [vmem:[#allocation4 + $0x8] sm:$0xff] }
  0x63   :  { %2459 = vmatprep.subr.bf16.mxu1 %v2578_v5  ;;  %v2252_v5 = vcombine.high %v967_v2, %v975_v3 }
  0x65   :  { %2438 = vmatpush3.bf16.msra.mxu0 %v2579_v6  ;;  %v976_v6 = vld [vmem:[#allocation4 + $0x48] sm:$0xff] }
  0x66   :  { %2460 = vmatpush3.bf16.msra.mxu1 %v2580_v7  ;;  %2479 = vmatprep.subr.bf16.mxu0 %v2646_v17  ;;  %v2253_v7 = vcombine.low %v968_v4, %v976_v6  ;;  %v2254_v8 = vcombine.high %v968_v4, %v976_v6  ;;  %v969_v6 = vld [vmem:[#allocation4 + $0x10] sm:$0xff] }
  0x67   :  { %2499 = vmatprep.subr.bf16.mxu1 %v2646_v17 }
  0x68   :  { %714 = vmatmul.mubr.bf16.vlgmr.msra.gmra.mrb[4].mxu0 %v78_v14  ;;  %v2269_v14 = vcombine.low %v984_v9, %v992_v10 }
  0x69   :  { %754 = vmatmul.mubr.bf16.vlgmr.msra.gmra.mrb[4].mxu1 %v80_v15  ;;  %2480 = vmatpush3.bf16.msra.mxu0 %v2581_v16  ;;  %v2286_v15 = vcombine.high %v1000_v12, %v1008_v13  ;;  %v1016_v16 = vld [vmem:[#allocation4 + $0x188] sm:$0xff] }
  0x6a   :  { %2481 = vmatprep.subr.bf16.mxu0 %v2646_v17  ;;  %2495 = vmatprep.mubr.msk.bf16.mxu0 %vm2647_vm0, %v2646_v17 }
  0x6b   :  { %2503 = vmatprep.mubr.msk.bf16.mxu1 %vm2647_vm0, %v2646_v17  ;;  %2500 = vmatpush3.bf16.msra.mxu1 %v2589_v53 }
  0x6c   :  { %2501 = vmatprep.subr.bf16.mxu1 %v2646_v17 }
  0x6d   :  { %2482 = vmatpush3.bf16.msra.mxu0 %v2582_v18 }
  0x6e   :  { %2483 = vmatprep.subr.bf16.mxu0 %v2646_v17 }
  0x6f   :  { %2502 = vmatpush3.bf16.msra.mxu1 %v2590_v62  ;;  %v1079_v62 = vld [vmem:[#allocation4 + $0x380] sm:$0xff] }
  0x70   :  { %1819 = vmatprep.subr.bf16.mxu1 %v2252_v5 }
  0x71   :  { %2484 = vmatpush3.bf16.msra.mxu0 %v2583_v19  ;;  %v983_v19 = vld [vmem:[#allocation4 + $0x80] sm:$0xff] }
  0x72   :  { %2485 = vmatprep.subr.bf16.mxu0 %v2646_v17 }
  0x75   :  { %2486 = vmatpush3.bf16.msra.mxu0 %v2584_v20  ;;  %v991_v20 = vld [vmem:[#allocation4 + $0xc0] sm:$0xff] }
  0x76   :  { %2487 = vmatprep.subr.bf16.mxu0 %v2646_v17 }
  0x79   :  { %2488 = vmatpush3.bf16.msra.mxu0 %v2585_v21 }
  0x7a   :  { %2489 = vmatprep.subr.bf16.mxu0 %v2646_v17 }
  0x7d   :  { %2490 = vmatpush3.bf16.msra.mxu0 %v2586_v22  ;;  %v2285_v22 = vcombine.low %v1000_v12, %v1008_v13  ;;  %v2650_v12 = vmov 0  }
  0x7e   :  { %2491 = vmatprep.subr.bf16.mxu0 %v2646_v17 }
  0x81   :  { %2492 = vmatpush3.bf16.msra.mxu0 %v2587_v23  ;;  %v2251_v23 = vcombine.low %v967_v2, %v975_v3  ;;  %v1088_v2 = vld [vmem:[#allocation4 + $0x3c8] sm:$0xff] }
  0x82   :  { %2493 = vmatprep.subr.bf16.mxu0 %v2646_v17  ;;  %v1024_v17 = vld [vmem:[#allocation4 + $0x1c8] sm:$0xff] }
  0x85   :  { %2494 = vmatpush3.bf16.msra.mxu0 %v2588_v24  ;;  %v2302_v24 = vcombine.high %v1016_v16, %v1024_v17 }
  0x86   :  { %1860 = vmatprep.subr.bf16.mxu0 %v2254_v8  ;;  %v970_v8 = vld [vmem:[#allocation4 + $0x18] sm:$0xff] }
  0xb3   :  { %v880_v63 = vpop.permute.xlu0 %879 }
 0x11b   :  { %v2395_v26 = vpop.f32.mrb[0].mxu0 }
 0x11c   :  { %v2417_v27 = vpop.f32.mrb[0].mxu1  ;;  %v2396_v29 = vpop.f32.mrb[1].mxu0 }
 0x11d   :  { %v2418_v30 = vpop.f32.mrb[1].mxu1  ;;  %v2397_v31 = vadd.f32 %v2396_v29, %v2395_v26  ;;  %v2398_v33 = vpop.f32.mrb[2].mxu0  ;;  %v2268_v26 = vcombine.high %v983_v19, %v991_v20  ;;  %v999_v29 = vld [vmem:[#allocation4 + $0x100] sm:$0xff] }
 0x11e   :  { %v2419_v32 = vadd.f32 %v2418_v30, %v2417_v27  ;;  %v2420_v34 = vpop.f32.mrb[2].mxu1  ;;  %v2399_v35 = vpop.f32.mrb[3].mxu0  ;;  %v1032_v27 = vld [vmem:[#allocation4 + $0x208] sm:$0xff]  ;;  %v1007_v30 = vld [vmem:[#allocation4 + $0x140] sm:$0xff] }
 0x11f   :  { %v2421_v36 = vpop.f32.mrb[3].mxu1  ;;  %v636_v37 = vadd.f32 %v2397_v31, %v2173_v28  ;;  %v1040_v28 = vld [vmem:[#allocation4 + $0x248] sm:$0xff]  ;;  %v2301_v31 = vcombine.low %v1016_v16, %v1024_v17  ;;  %v2284_v34 = vcombine.high %v999_v29, %v1007_v30 }
 0x120   :  { %v2318_v33 = vcombine.high %v1032_v27, %v1040_v28  ;;  %v1048_v35 = vld [vmem:[#allocation4 + $0x288] sm:$0xff] }
 0x121   :  { %v676_v38 = vadd.f32 %v2419_v32, %v636_v37  ;;  %v2267_v32 = vcombine.low %v983_v19, %v991_v20  ;;  %v1056_v36 = vld [vmem:[#allocation4 + $0x2c8] sm:$0xff]  ;;  %v1015_v37 = vld [vmem:[#allocation4 + $0x180] sm:$0xff] }
 0x13b   :  { %v2439_v39 = vpop.f32.mrb[4].mxu0 }
 0x13c   :  { %v2461_v40 = vpop.f32.mrb[4].mxu1  ;;  %v2440_v41 = vpop.f32.mrb[5].mxu0 }
 0x13d   :  { %v2441_v42 = vadd.f32 %v2440_v41, %v2439_v39  ;;  %v2462_v43 = vpop.f32.mrb[5].mxu1  ;;  %v2442_v44 = vpop.f32.mrb[6].mxu0  ;;  %v2317_v39 = vcombine.low %v1032_v27, %v1040_v28  ;;  %v2334_v41 = vcombine.high %v1048_v35, %v1056_v36 }
 0x13e   :  { %v2463_v45 = vadd.f32 %v2462_v43, %v2461_v40  ;;  %v2464_v46 = vpop.f32.mrb[6].mxu1  ;;  %v2443_v47 = vpop.f32.mrb[7].mxu0  ;;  %v2283_v40 = vcombine.low %v999_v29, %v1007_v30  ;;  %v1064_v43 = vld [vmem:[#allocation4 + $0x308] sm:$0xff] }
 0x13f   :  { %v716_v48 = vadd.f32 %v2441_v42, %v676_v38  ;;  %v2465_v49 = vpop.f32.mrb[7].mxu1  ;;  %v1023_v38 = vld [vmem:[#allocation4 + $0x1c0] sm:$0xff]  ;;  %v1072_v44 = vld [vmem:[#allocation4 + $0x348] sm:$0xff]  ;;  %v2333_v47 = vcombine.low %v1048_v35, %v1056_v36 }
 0x140   :  { %v2300_v42 = vcombine.high %v1015_v37, %v1023_v38  ;;  %v1039_v46 = vld [vmem:[#allocation4 + $0x240] sm:$0xff]  ;;  %v2350_v49 = vcombine.high %v1064_v43, %v1072_v44  ;;  %v2349_v53 = vcombine.low %v1064_v43, %v1072_v44 }
 0x141   :  { %v756_v50 = vadd.f32 %v2463_v45, %v716_v48  ;;  %v1031_v45 = vld [vmem:[#allocation4 + $0x200] sm:$0xff]  ;;  %v2299_v48 = vcombine.low %v1015_v37, %v1023_v38 }
 0x143   :  { %v761_v51 = vmax.f32 %v756_v50, 0.0  ;;  %v2316_v50 = vcombine.high %v1031_v45, %v1039_v46 }
 0x145   :  { %v762_v52 = vpack.c.bf16 %v761_v51, %v761_v51  ;;  %v1047_v51 = vld [vmem:[#allocation4 + $0x280] sm:$0xff] }
 0x147   :  { %2496 = vmatmul.mubr.bf16.vlgmr.msra.gmra.mrb[8].mxu0 %v762_v52  ;;  %v1055_v52 = vld [vmem:[#allocation4 + $0x2c0] sm:$0xff] }
 0x148   :  { %1861 = vmatpush1.bf16.msra.mxu0 %v2253_v7  ;;  %v977_v7 = vld [vmem:[#allocation4 + $0x50] sm:$0xff]  ;;  %1892 = vmatprep.mubr.bf16.mxu0 %v2650_v12 }
 0x149   :  { %1862 = vmatprep.subr.bf16.mxu0 %v2270_v11  ;;  %v2255_v9 = vcombine.low %v969_v6, %v977_v7  ;;  %v2256_v10 = vcombine.high %v969_v6, %v977_v7  ;;  %v978_v11 = vld [vmem:[#allocation4 + $0x58] sm:$0xff] }
 0x14a   :  { %v2257_v13 = vcombine.low %v970_v8, %v978_v11 }
 0x14c   :  { %1863 = vmatpush1.bf16.msra.mxu0 %v2269_v14  ;;  %v2258_v14 = vcombine.high %v970_v8, %v978_v11  ;;  %v1081_v8 = vld [vmem:[#allocation4 + $0x390] sm:$0xff]  ;;  %v1090_v11 = vld [vmem:[#allocation4 + $0x3d8] sm:$0xff] }
 0x14d   :  { %1864 = vmatprep.subr.bf16.mxu0 %v2286_v15 }
 0x150   :  { %1865 = vmatpush1.bf16.msra.mxu0 %v2285_v22  ;;  %v985_v22 = vld [vmem:[#allocation4 + $0x90] sm:$0xff] }
 0x151   :  { %1866 = vmatprep.subr.bf16.mxu0 %v2302_v24  ;;  %v993_v24 = vld [vmem:[#allocation4 + $0xd0] sm:$0xff] }
 0x152   :  { %v2272_v29 = vcombine.high %v985_v22, %v993_v24  ;;  %v2271_v35 = vcombine.low %v985_v22, %v993_v24 }
 0x154   :  { %1867 = vmatpush1.bf16.msra.mxu0 %v2301_v31  ;;  %v1001_v31 = vld [vmem:[#allocation4 + $0x110] sm:$0xff] }
 0x155   :  { %1868 = vmatprep.subr.bf16.mxu0 %v2318_v33  ;;  %v1002_v33 = vld [vmem:[#allocation4 + $0x118] sm:$0xff] }
 0x158   :  { %1869 = vmatpush1.bf16.msra.mxu0 %v2317_v39  ;;  %v1017_v39 = vld [vmem:[#allocation4 + $0x190] sm:$0xff] }
 0x159   :  { %1870 = vmatprep.subr.bf16.mxu0 %v2334_v41  ;;  %v1018_v41 = vld [vmem:[#allocation4 + $0x198] sm:$0xff] }
 0x15c   :  { %1871 = vmatpush1.bf16.msra.mxu0 %v2333_v47  ;;  %v1033_v47 = vld [vmem:[#allocation4 + $0x210] sm:$0xff] }
 0x15d   :  { %1872 = vmatprep.subr.bf16.mxu0 %v2350_v49  ;;  %v1034_v49 = vld [vmem:[#allocation4 + $0x218] sm:$0xff] }
 0x160   :  { %1873 = vmatpush1.bf16.msra.mxu0 %v2349_v53 }
 0x21a   :  { %v868_v55 = vpop.f32.mrb[8].mxu0 }
 0x21b   :  { %v2798_v56 = vadd.f32 %v2238_v54, %v868_v55  ;;  %v2497_v57 = vpop.f32.mrb[9].mxu0  ;;  %v2315_v54 = vcombine.low %v1031_v45, %v1039_v46  ;;  %v2332_v55 = vcombine.high %v1047_v51, %v1055_v52 }
 0x21c   :  { %v871_v58 = vpop.f32.mrb[10].mxu0  ;;  %v1063_v57 = vld [vmem:[#allocation4 + $0x300] sm:$0xff] }
 0x21d   :  { %v874_v59 = vmul.f32 0.5, %v2798_v56  ;;  %v2498_v60 = vpop.f32.mrb[11].mxu0  ;;  %v1071_v58 = vld [vmem:[#allocation4 + $0x340] sm:$0xff] }
 0x21e   :  { %v2348_v60 = vcombine.high %v1063_v57, %v1071_v58 }
 0x21f   :  { %v875_v61 = vmul.f32 1.442695, %v874_v59  ;;  %v2331_v59 = vcombine.low %v1047_v51, %v1055_v52 }
 0x221   :  { %2591 = vpow2.f32 %v875_v61  ;;  %v2347_v61 = vcombine.low %v1063_v57, %v1071_v58  ;;  %v1057_v57 = vld [vmem:[#allocation4 + $0x2d0] sm:$0xff]  ;;  %v1050_v58 = vld [vmem:[#allocation4 + $0x298] sm:$0xff] }
 0x22b   :  { %v2592_v0 = vpop.eup %2591 }
 0x22c   :  { %v882_v1 = vmul.f32 %v2592_v0, %v880_v63  ;;  %v1087_v63 = vld [vmem:[#allocation4 + $0x3c0] sm:$0xff]  ;;  %v1080_v0 = vld [vmem:[#allocation4 + $0x388] sm:$0xff] }
 0x22d   :  { %v2363_v3 = vcombine.low %v1079_v62, %v1087_v63  ;;  %v2365_v4 = vcombine.low %v1080_v0, %v1088_v2  ;;  %v2366_v5 = vcombine.high %v1080_v0, %v1088_v2  ;;  %v1065_v0 = vld [vmem:[#allocation4 + $0x310] sm:$0xff]  ;;  %v1066_v2 = vld [vmem:[#allocation4 + $0x318] sm:$0xff] }
 0x22e   :  { %884 = vrot.lane.b32.xlu0 %v882_v1, %s2649_s23  ;;  %v2364_v1 = vcombine.high %v1079_v62, %v1087_v63 }
 0x22f   :  { %1874 = vmatprep.subr.bf16.mxu0 %v2366_v5 }
 0x230   :  { %1875 = vmatpush1.bf16.msra.mxu0 %v2365_v4 }
 0x231   :  { %1942 = vmatprep.subr.bf16.mxu0 %v2258_v14 }
 0x2a0   :  { %v885_v18 = vpop.permute.xlu0 %884 }
 0x2a1   :  { %v887_v21 = vadd.f32 %v885_v18, %v2798_v56  ;;  %v2247_v18 = vld [vmem:[%s2902_s7] ss:$0 sm:$0xff] }
 0x2a3   :  { %v897_v25 = vpack.c.bf16 %v887_v21, %v887_v21  ;;  %889 = vrot.lane.b32.xlu1 %v887_v21, %s2642_s27 }
 0x2a5   :  { %2504 = vmatmul.mubr.msk.bf16.vlgmr.msra.gmra.mrb[8].mxu1 %vm921_vm1, %v897_v25  ;;  %v986_v25 = vld [vmem:[#allocation4 + $0x98] sm:$0xff] }
 0x2a6   :  { %1820 = vmatpush1.bf16.msra.mxu1 %v2251_v23  ;;  %1851 = vmatprep.mubr.bf16.mxu1 %v2650_v12 }
 0x2a7   :  { %1821 = vmatprep.subr.bf16.mxu1 %v2268_v26  ;;  %v994_v26 = vld [vmem:[#allocation4 + $0xd8] sm:$0xff] }
 0x2a8   :  { %v2274_v30 = vcombine.high %v986_v25, %v994_v26  ;;  %v2273_v36 = vcombine.low %v986_v25, %v994_v26  ;;  %v987_v25 = vld [vmem:[#allocation4 + $0xa0] sm:$0xff] }
 0x2a9   :  { %v995_v26 = vld [vmem:[#allocation4 + $0xe0] sm:$0xff] }
 0x2aa   :  { %1822 = vmatpush1.bf16.msra.mxu1 %v2267_v32  ;;  %v1009_v32 = vld [vmem:[#allocation4 + $0x150] sm:$0xff] }
 0x2ab   :  { %1823 = vmatprep.subr.bf16.mxu1 %v2284_v34  ;;  %v1010_v34 = vld [vmem:[#allocation4 + $0x158] sm:$0xff]  ;;  %v2288_v37 = vcombine.high %v1001_v31, %v1009_v32  ;;  %v2287_v43 = vcombine.low %v1001_v31, %v1009_v32  ;;  %v2276_v31 = vcombine.high %v987_v25, %v995_v26 }
 0x2ac   :  { %v2290_v38 = vcombine.high %v1002_v33, %v1010_v34  ;;  %v2289_v44 = vcombine.low %v1002_v33, %v1010_v34  ;;  %v1003_v33 = vld [vmem:[#allocation4 + $0x120] sm:$0xff] }
 0x2ad   :  { %v1011_v34 = vld [vmem:[#allocation4 + $0x160] sm:$0xff] }
 0x2ae   :  { %1824 = vmatpush1.bf16.msra.mxu1 %v2283_v40  ;;  %v1025_v40 = vld [vmem:[#allocation4 + $0x1d0] sm:$0xff] }
 0x2af   :  { %1825 = vmatprep.subr.bf16.mxu1 %v2300_v42  ;;  %v1026_v42 = vld [vmem:[#allocation4 + $0x1d8] sm:$0xff]  ;;  %v2304_v45 = vcombine.high %v1017_v39, %v1025_v40  ;;  %v2303_v51 = vcombine.low %v1017_v39, %v1025_v40  ;;  %v2292_v39 = vcombine.high %v1003_v33, %v1011_v34 }
 0x2b0   :  { %v2306_v46 = vcombine.high %v1018_v41, %v1026_v42  ;;  %v2305_v52 = vcombine.low %v1018_v41, %v1026_v42  ;;  %v1019_v41 = vld [vmem:[#allocation4 + $0x1a0] sm:$0xff] }
 0x2b1   :  { %v1027_v42 = vld [vmem:[#allocation4 + $0x1e0] sm:$0xff] }
 0x2b2   :  { %1826 = vmatpush1.bf16.msra.mxu1 %v2299_v48  ;;  %v1041_v48 = vld [vmem:[#allocation4 + $0x250] sm:$0xff] }
 0x2b3   :  { %1827 = vmatprep.subr.bf16.mxu1 %v2316_v50  ;;  %v1042_v50 = vld [vmem:[#allocation4 + $0x258] sm:$0xff]  ;;  %v2320_v53 = vcombine.high %v1033_v47, %v1041_v48 }
 0x2b6   :  { %1828 = vmatpush1.bf16.msra.mxu1 %v2315_v54  ;;  %v2322_v54 = vcombine.high %v1034_v49, %v1042_v50 }
 0x2b7   :  { %1829 = vmatprep.subr.bf16.mxu1 %v2332_v55  ;;  %v1049_v55 = vld [vmem:[#allocation4 + $0x290] sm:$0xff] }
 0x2b8   :  { %v2336_v62 = vcombine.high %v1049_v55, %v1057_v57  ;;  %v2335_v4 = vcombine.low %v1049_v55, %v1057_v57 }
 0x2ba   :  { %1830 = vmatpush1.bf16.msra.mxu1 %v2331_v59  ;;  %v1058_v59 = vld [vmem:[#allocation4 + $0x2d8] sm:$0xff] }
 0x2bb   :  { %1831 = vmatprep.subr.bf16.mxu1 %v2348_v60  ;;  %v2319_v60 = vcombine.low %v1033_v47, %v1041_v48  ;;  %v2338_v63 = vcombine.high %v1050_v58, %v1058_v59  ;;  %v2337_v5 = vcombine.low %v1050_v58, %v1058_v59  ;;  %v2308_v47 = vcombine.high %v1019_v41, %v1027_v42  ;;  %v1051_v58 = vld [vmem:[#allocation4 + $0x2a0] sm:$0xff] }
 0x2bc   :  { %v1059_v59 = vld [vmem:[#allocation4 + $0x2e0] sm:$0xff] }
 0x2be   :  { %1832 = vmatpush1.bf16.msra.mxu1 %v2347_v61  ;;  %v2321_v61 = vcombine.low %v1034_v49, %v1042_v50  ;;  %v1035_v49 = vld [vmem:[#allocation4 + $0x220] sm:$0xff] }
 0x2bf   :  { %1833 = vmatprep.subr.bf16.mxu1 %v2364_v1  ;;  %v1073_v1 = vld [vmem:[#allocation4 + $0x350] sm:$0xff]  ;;  %v1043_v50 = vld [vmem:[#allocation4 + $0x260] sm:$0xff] }
 0x2c0   :  { %v2352_v6 = vcombine.high %v1065_v0, %v1073_v1  ;;  %v2324_v55 = vcombine.high %v1035_v49, %v1043_v50 }
 0x2c2   :  { %1834 = vmatpush1.bf16.msra.mxu1 %v2363_v3  ;;  %v1074_v3 = vld [vmem:[#allocation4 + $0x358] sm:$0xff] }
 0x2c3   :  { %1901 = vmatprep.subr.bf16.mxu1 %v2256_v10  ;;  %v2354_v7 = vcombine.high %v1066_v2, %v1074_v3  ;;  %v1082_v10 = vld [vmem:[#allocation4 + $0x398] sm:$0xff]  ;;  %v2353_v14 = vcombine.low %v1066_v2, %v1074_v3  ;;  %v1067_v2 = vld [vmem:[#allocation4 + $0x320] sm:$0xff] }
 0x2c4   :  { %v2369_v22 = vcombine.low %v1082_v10, %v1090_v11  ;;  %v1075_v3 = vld [vmem:[#allocation4 + $0x360] sm:$0xff] }
 0x315   :  { %v890_v15 = vpop.permute.xlu1 %889 }
 0x316   :  { %v893_v16 = vsel %vm892_vm2, %v2798_v56, %v890_v15 }
 0x317   :  { %v895_v17 = vsel %vm894_vm3, %v893_v16, 0.0  ;;  %v2370_v16 = vcombine.high %v1082_v10, %v1090_v11  ;;  %v1083_v10 = vld [vmem:[#allocation4 + $0x3a0] sm:$0xff] }
 0x318   :  { %896 = vst [vmem:[%s2905_s10] sm:$0xff] %v895_v17  ;;  %v971_v17 = vld [vmem:[#allocation4 + $0x20] sm:$0xff] }
 0x319   :  { %v1091_v11 = vld [vmem:[#allocation4 + $0x3e0] sm:$0xff] }
 0x378   :  { %v959_v19 = vpop.f32.mrb[8].mxu1 }
 0x379   :  { %v960_v20 = vadd.f32 %v2247_v18, %v959_v19  ;;  %v2505_v21 = vpop.f32.mrb[9].mxu1  ;;  %v979_v18 = vld [vmem:[#allocation4 + $0x60] sm:$0xff]  ;;  %v972_v19 = vld [vmem:[#allocation4 + $0x28] sm:$0xff] }
 0x37a   :  { %v962_v23 = vpop.f32.mrb[10].mxu1 }
 0x37b   :  { %v965_v27 = vmax.f32 %v960_v20, 0.0  ;;  %v2506_v28 = vpop.f32.mrb[11].mxu1  ;;  %v980_v20 = vld [vmem:[#allocation4 + $0x68] sm:$0xff]  ;;  %v2260_v23 = vcombine.high %v971_v17, %v979_v18 }
 0x37c   :  { %v2262_v24 = vcombine.high %v972_v19, %v980_v20  ;;  %v996_v28 = vld [vmem:[#allocation4 + $0xe8] sm:$0xff] }
 0x37d   :  { %v2815_v56 = vpack.c.bf16 %v965_v27, %v965_v27  ;;  %v988_v27 = vld [vmem:[#allocation4 + $0xa8] sm:$0xff] }
 0x37e   :  { %v2278_v32 = vcombine.high %v988_v27, %v996_v28 }
 0x37f   :  { %1852 = vmatmul.mubr.bf16.vlgmr.msra.gmra.mrb[12].mxu1 %v2815_v56  ;;  %1893 = vmatmul.mubr.bf16.vlgmr.msra.gmra.mrb[12].mxu0 %v2815_v56 }
 0x380   :  { %1902 = vmatpush1.bf16.msra.mxu1 %v2255_v9  ;;  %1943 = vmatpush1.bf16.msra.mxu0 %v2257_v13  ;;  %v1089_v9 = vld [vmem:[#allocation4 + $0x3d0] sm:$0xff]  ;;  %v2351_v13 = vcombine.low %v1065_v0, %v1073_v1  ;;  %v2340_v0 = vcombine.high %v1051_v58, %v1059_v59 }
 0x381   :  { %1903 = vmatprep.subr.bf16.mxu1 %v2272_v29  ;;  %1944 = vmatprep.subr.bf16.mxu0 %v2274_v30  ;;  %v2368_v15 = vcombine.high %v1081_v8, %v1089_v9  ;;  %v2367_v21 = vcombine.low %v1081_v8, %v1089_v9  ;;  %v2259_v29 = vcombine.low %v971_v17, %v979_v18 }
 0x382   :  { %1933 = vmatprep.mubr.bf16.mxu1 %v2650_v12  ;;  %1974 = vmatprep.mubr.bf16.mxu0 %v2650_v12  ;;  %v2261_v30 = vcombine.low %v972_v19, %v980_v20  ;;  %v2356_v8 = vcombine.high %v1067_v2, %v1075_v3  ;;  %v2372_v17 = vcombine.high %v1083_v10, %v1091_v11  ;;  %v973_v19 = vld [vmem:[#allocation4 + $0x30] sm:$0xff] }
 0x383   :  { %v981_v20 = vld [vmem:[#allocation4 + $0x70] sm:$0xff] }
 0x384   :  { %1904 = vmatpush1.bf16.msra.mxu1 %v2271_v35  ;;  %1945 = vmatpush1.bf16.msra.mxu0 %v2273_v36  ;;  %v1004_v35 = vld [vmem:[#allocation4 + $0x128] sm:$0xff] }
 0x385   :  { %1905 = vmatprep.subr.bf16.mxu1 %v2288_v37  ;;  %1946 = vmatprep.subr.bf16.mxu0 %v2290_v38  ;;  %v1012_v36 = vld [vmem:[#allocation4 + $0x168] sm:$0xff]  ;;  %v2275_v37 = vcombine.low %v987_v25, %v995_v26  ;;  %v2277_v38 = vcombine.low %v988_v27, %v996_v28  ;;  %v2264_v25 = vcombine.high %v973_v19, %v981_v20  ;;  %v989_v27 = vld [vmem:[#allocation4 + $0xb0] sm:$0xff] }
 0x386   :  { %v2294_v40 = vcombine.high %v1004_v35, %v1012_v36  ;;  %v997_v28 = vld [vmem:[#allocation4 + $0xf0] sm:$0xff] }
 0x388   :  { %1906 = vmatpush1.bf16.msra.mxu1 %v2287_v43  ;;  %1947 = vmatpush1.bf16.msra.mxu0 %v2289_v44  ;;  %v1020_v43 = vld [vmem:[#allocation4 + $0x1a8] sm:$0xff] }
 0x389   :  { %1907 = vmatprep.subr.bf16.mxu1 %v2304_v45  ;;  %1948 = vmatprep.subr.bf16.mxu0 %v2306_v46  ;;  %v1028_v44 = vld [vmem:[#allocation4 + $0x1e8] sm:$0xff]  ;;  %v2291_v45 = vcombine.low %v1003_v33, %v1011_v34  ;;  %v2293_v46 = vcombine.low %v1004_v35, %v1012_v36  ;;  %v2280_v33 = vcombine.high %v989_v27, %v997_v28  ;;  %v1005_v35 = vld [vmem:[#allocation4 + $0x130] sm:$0xff] }
 0x38a   :  { %v2310_v48 = vcombine.high %v1020_v43, %v1028_v44  ;;  %v1013_v36 = vld [vmem:[#allocation4 + $0x170] sm:$0xff] }
 0x38c   :  { %1908 = vmatpush1.bf16.msra.mxu1 %v2303_v51  ;;  %1949 = vmatpush1.bf16.msra.mxu0 %v2305_v52  ;;  %v1036_v51 = vld [vmem:[#allocation4 + $0x228] sm:$0xff] }
 0x38d   :  { %1909 = vmatprep.subr.bf16.mxu1 %v2320_v53  ;;  %1950 = vmatprep.subr.bf16.mxu0 %v2322_v54  ;;  %v1044_v52 = vld [vmem:[#allocation4 + $0x268] sm:$0xff]  ;;  %v2307_v53 = vcombine.low %v1019_v41, %v1027_v42  ;;  %v2309_v54 = vcombine.low %v1020_v43, %v1028_v44  ;;  %v2296_v41 = vcombine.high %v1005_v35, %v1013_v36  ;;  %v1021_v43 = vld [vmem:[#allocation4 + $0x1b0] sm:$0xff] }
 0x38e   :  { %v2326_v57 = vcombine.high %v1036_v51, %v1044_v52  ;;  %v1029_v44 = vld [vmem:[#allocation4 + $0x1f0] sm:$0xff] }
 0x390   :  { %1910 = vmatpush1.bf16.msra.mxu1 %v2319_v60  ;;  %1951 = vmatpush1.bf16.msra.mxu0 %v2321_v61  ;;  %v1052_v60 = vld [vmem:[#allocation4 + $0x2a8] sm:$0xff] }
 0x391   :  { %1911 = vmatprep.subr.bf16.mxu1 %v2336_v62  ;;  %1952 = vmatprep.subr.bf16.mxu0 %v2338_v63  ;;  %v1060_v61 = vld [vmem:[#allocation4 + $0x2e8] sm:$0xff]  ;;  %v2323_v62 = vcombine.low %v1035_v49, %v1043_v50  ;;  %v2325_v63 = vcombine.low %v1036_v51, %v1044_v52  ;;  %v2312_v49 = vcombine.high %v1021_v43, %v1029_v44  ;;  %v1037_v51 = vld [vmem:[#allocation4 + $0x230] sm:$0xff] }
 0x392   :  { %v2342_v1 = vcombine.high %v1052_v60, %v1060_v61  ;;  %v1045_v52 = vld [vmem:[#allocation4 + $0x270] sm:$0xff] }
 0x394   :  { %1912 = vmatpush1.bf16.msra.mxu1 %v2335_v4  ;;  %1953 = vmatpush1.bf16.msra.mxu0 %v2337_v5  ;;  %v1068_v4 = vld [vmem:[#allocation4 + $0x328] sm:$0xff] }
 0x395   :  { %1913 = vmatprep.subr.bf16.mxu1 %v2352_v6  ;;  %1954 = vmatprep.subr.bf16.mxu0 %v2354_v7  ;;  %v1076_v5 = vld [vmem:[#allocation4 + $0x368] sm:$0xff]  ;;  %v2339_v6 = vcombine.low %v1051_v58, %v1059_v59  ;;  %v2341_v7 = vcombine.low %v1052_v60, %v1060_v61  ;;  %v2328_v58 = vcombine.high %v1037_v51, %v1045_v52  ;;  %v1053_v59 = vld [vmem:[#allocation4 + $0x2b0] sm:$0xff]  ;;  %v1054_v61 = vld [vmem:[#allocation4 + $0x2b8] sm:$0xff] }
 0x396   :  { %v2358_v9 = vcombine.high %v1068_v4, %v1076_v5  ;;  %v1061_v60 = vld [vmem:[#allocation4 + $0x2f0] sm:$0xff] }
 0x398   :  { %1914 = vmatpush1.bf16.msra.mxu1 %v2351_v13  ;;  %1955 = vmatpush1.bf16.msra.mxu0 %v2353_v14  ;;  %v1084_v13 = vld [vmem:[#allocation4 + $0x3a8] sm:$0xff] }
 0x399   :  { %1915 = vmatprep.subr.bf16.mxu1 %v2368_v15  ;;  %1956 = vmatprep.subr.bf16.mxu0 %v2370_v16  ;;  %v1092_v14 = vld [vmem:[#allocation4 + $0x3e8] sm:$0xff]  ;;  %v2355_v15 = vcombine.low %v1067_v2, %v1075_v3  ;;  %v2357_v16 = vcombine.low %v1068_v4, %v1076_v5  ;;  %v1069_v3 = vld [vmem:[#allocation4 + $0x330] sm:$0xff]  ;;  %v1070_v5 = vld [vmem:[#allocation4 + $0x338] sm:$0xff] }
 0x39a   :  { %v2374_v18 = vcombine.high %v1084_v13, %v1092_v14  ;;  %v1077_v4 = vld [vmem:[#allocation4 + $0x370] sm:$0xff] }
 0x39c   :  { %1916 = vmatpush1.bf16.msra.mxu1 %v2367_v21  ;;  %1957 = vmatpush1.bf16.msra.mxu0 %v2369_v22  ;;  %v974_v21 = vld [vmem:[#allocation4 + $0x38] sm:$0xff] }
 0x39d   :  { %1983 = vmatprep.subr.bf16.mxu1 %v2260_v23  ;;  %2024 = vmatprep.subr.bf16.mxu0 %v2262_v24  ;;  %v982_v22 = vld [vmem:[#allocation4 + $0x78] sm:$0xff]  ;;  %v2371_v23 = vcombine.low %v1083_v10, %v1091_v11  ;;  %v2373_v24 = vcombine.low %v1084_v13, %v1092_v14  ;;  %v1085_v11 = vld [vmem:[#allocation4 + $0x3b0] sm:$0xff] }
 0x39e   :  { %v2266_v26 = vcombine.high %v974_v21, %v982_v22  ;;  %v1093_v13 = vld [vmem:[#allocation4 + $0x3f0] sm:$0xff]  ;;  %v1086_v14 = vld [vmem:[#allocation4 + $0x3b8] sm:$0xff] }
 0x39f   :  { %1934 = vmatmul.mubr.bf16.vlgmr.msra.gmra.mrb[16].mxu1 %v2815_v56  ;;  %1975 = vmatmul.mubr.bf16.vlgmr.msra.gmra.mrb[16].mxu0 %v2815_v56 }
 0x3a0   :  { %1984 = vmatpush1.bf16.msra.mxu1 %v2259_v29  ;;  %2025 = vmatpush1.bf16.msra.mxu0 %v2261_v30  ;;  %v990_v29 = vld [vmem:[#allocation4 + $0xb8] sm:$0xff] }
 0x3a1   :  { %1985 = vmatprep.subr.bf16.mxu1 %v2276_v31  ;;  %2026 = vmatprep.subr.bf16.mxu0 %v2278_v32  ;;  %v998_v30 = vld [vmem:[#allocation4 + $0xf8] sm:$0xff]  ;;  %v2263_v31 = vcombine.low %v973_v19, %v981_v20  ;;  %v2265_v32 = vcombine.low %v974_v21, %v982_v22  ;;  %v2375_v20 = vcombine.low %v1085_v11, %v1093_v13  ;;  %v1099_v22 = vlaneseq }
 0x3a2   :  { %2015 = vmatprep.mubr.bf16.mxu1 %v2650_v12  ;;  %2056 = vmatprep.mubr.bf16.mxu0 %v2650_v12  ;;  %v2282_v34 = vcombine.high %v990_v29, %v998_v30 }
 0x3a4   :  { %1986 = vmatpush1.bf16.msra.mxu1 %v2275_v37  ;;  %2027 = vmatpush1.bf16.msra.mxu0 %v2277_v38  ;;  %v1006_v37 = vld [vmem:[#allocation4 + $0x138] sm:$0xff] }
 0x3a5   :  { %1987 = vmatprep.subr.bf16.mxu1 %v2292_v39  ;;  %2028 = vmatprep.subr.bf16.mxu0 %v2294_v40  ;;  %v1014_v38 = vld [vmem:[#allocation4 + $0x178] sm:$0xff]  ;;  %v2279_v39 = vcombine.low %v989_v27, %v997_v28  ;;  %v2281_v40 = vcombine.low %v990_v29, %v998_v30 }
 0x3a6   :  { %v2298_v42 = vcombine.high %v1006_v37, %v1014_v38 }
 0x3a8   :  { %1988 = vmatpush1.bf16.msra.mxu1 %v2291_v45  ;;  %2029 = vmatpush1.bf16.msra.mxu0 %v2293_v46  ;;  %v1022_v45 = vld [vmem:[#allocation4 + $0x1b8] sm:$0xff] }
 0x3a9   :  { %1989 = vmatprep.subr.bf16.mxu1 %v2308_v47  ;;  %2030 = vmatprep.subr.bf16.mxu0 %v2310_v48  ;;  %v1030_v46 = vld [vmem:[#allocation4 + $0x1f8] sm:$0xff]  ;;  %v2295_v47 = vcombine.low %v1005_v35, %v1013_v36  ;;  %v2297_v48 = vcombine.low %v1006_v37, %v1014_v38 }
 0x3aa   :  { %v2314_v50 = vcombine.high %v1022_v45, %v1030_v46 }
 0x3ac   :  { %1990 = vmatpush1.bf16.msra.mxu1 %v2307_v53  ;;  %2031 = vmatpush1.bf16.msra.mxu0 %v2309_v54  ;;  %v1038_v53 = vld [vmem:[#allocation4 + $0x238] sm:$0xff] }
 0x3ad   :  { %1991 = vmatprep.subr.bf16.mxu1 %v2324_v55  ;;  %2032 = vmatprep.subr.bf16.mxu0 %v2326_v57  ;;  %v1046_v54 = vld [vmem:[#allocation4 + $0x278] sm:$0xff]  ;;  %v2311_v55 = vcombine.low %v1021_v43, %v1029_v44  ;;  %v2313_v57 = vcombine.low %v1022_v45, %v1030_v46 }
 0x3b0   :  { %1992 = vmatpush1.bf16.msra.mxu1 %v2323_v62  ;;  %2033 = vmatpush1.bf16.msra.mxu0 %v2325_v63  ;;  %v1062_v62 = vld [vmem:[#allocation4 + $0x2f8] sm:$0xff]  ;;  %v2327_v63 = vcombine.low %v1037_v51, %v1045_v52 }
 0x3b1   :  { %1993 = vmatprep.subr.bf16.mxu1 %v2340_v0  ;;  %2034 = vmatprep.subr.bf16.mxu0 %v2342_v1  ;;  %v2329_v0 = vcombine.low %v1038_v53, %v1046_v54  ;;  %v2344_v1 = vcombine.high %v1053_v59, %v1061_v60  ;;  %v2346_v2 = vcombine.high %v1054_v61, %v1062_v62 }
 0x3b4   :  { %1994 = vmatpush1.bf16.msra.mxu1 %v2339_v6  ;;  %2035 = vmatpush1.bf16.msra.mxu0 %v2341_v7  ;;  %v1078_v6 = vld [vmem:[#allocation4 + $0x378] sm:$0xff]  ;;  %v2343_v7 = vcombine.low %v1053_v59, %v1061_v60 }
 0x3b5   :  { %1995 = vmatprep.subr.bf16.mxu1 %v2356_v8  ;;  %2036 = vmatprep.subr.bf16.mxu0 %v2358_v9  ;;  %v2345_v8 = vcombine.low %v1054_v61, %v1062_v62  ;;  %v2360_v9 = vcombine.high %v1069_v3, %v1077_v4  ;;  %v2362_v10 = vcombine.high %v1070_v5, %v1078_v6 }
 0x3b8   :  { %1996 = vmatpush1.bf16.msra.mxu1 %v2355_v15  ;;  %2037 = vmatpush1.bf16.msra.mxu0 %v2357_v16  ;;  %v1094_v15 = vld [vmem:[#allocation4 + $0x3f8] sm:$0xff]  ;;  %v2359_v16 = vcombine.low %v1069_v3, %v1077_v4 }
 0x3b9   :  { %1997 = vmatprep.subr.bf16.mxu1 %v2372_v17  ;;  %2038 = vmatprep.subr.bf16.mxu0 %v2374_v18  ;;  %v2361_v17 = vcombine.low %v1070_v5, %v1078_v6  ;;  %v2376_v18 = vcombine.high %v1085_v11, %v1093_v13  ;;  %v2378_v19 = vcombine.high %v1086_v14, %v1094_v15 }
 0x3ba   :  { %v2377_v21 = vcombine.low %v1086_v14, %v1094_v15 }
 0x3bc   :  { %1998 = vmatpush1.bf16.msra.mxu1 %v2371_v23  ;;  %2039 = vmatpush1.bf16.msra.mxu0 %v2373_v24  ;;  %v2831_v23 = vshrl.u32 %v1099_v22, 7 }
 0x3bd   :  { %2065 = vmatprep.subr.bf16.mxu1 %v2264_v25  ;;  %2106 = vmatprep.subr.bf16.mxu0 %v2266_v26  ;;  %v1095_v26 = vld [vmem:[%s2904_s9] sm:$0xff] }
 0x3be   :  { %v1101_v24 = vsub.s32 0, %v2831_v23  ;;  %v1109_v25 = vsub.s32 2, %v2831_v23  ;;  %v1105_v27 = vsub.s32 1, %v2831_v23  ;;  %v1113_v28 = vsub.s32 3, %v2831_v23 }
 0x3bf   :  { %2016 = vmatmul.mubr.bf16.vlgmr.msra.gmra.mrb[20].mxu1 %v2815_v56  ;;  %2057 = vmatmul.mubr.bf16.vlgmr.msra.gmra.mrb[20].mxu0 %v2815_v56  ;;  %v1117_v44 = vsub.s32 4, %v2831_v23  ;;  %v1125_v45 = vsub.s32 6, %v2831_v23  ;;  %v1121_v46 = vsub.s32 5, %v2831_v23 }
 0x3c0   :  { %2066 = vmatpush1.bf16.msra.mxu1 %v2263_v31  ;;  %2107 = vmatpush1.bf16.msra.mxu0 %v2265_v32  ;;  %v1102_v29 = vrot.slane %v1095_v26, %v1101_v24  ;;  %v1110_v30 = vrot.slane %v1095_v26, %v1109_v25  ;;  %v1106_v31 = vrot.slane %v1095_v26, %v1105_v27 }
 0x3c1   :  { %2067 = vmatprep.subr.bf16.mxu1 %v2280_v33  ;;  %2108 = vmatprep.subr.bf16.mxu0 %v2282_v34  ;;  %v1114_v32 = vrot.slane %v1095_v26, %v1113_v28 }
 0x3c2   :  { %2097 = vmatprep.mubr.bf16.mxu1 %v2650_v12  ;;  %2138 = vmatprep.mubr.bf16.mxu0 %v2650_v12  ;;  %v2330_v12 = vcombine.high %v1038_v53, %v1046_v54 }
 0x3c4   :  { %2068 = vmatpush1.bf16.msra.mxu1 %v2279_v39  ;;  %2109 = vmatpush1.bf16.msra.mxu0 %v2281_v40 }
 0x3c5   :  { %2069 = vmatprep.subr.bf16.mxu1 %v2296_v41  ;;  %2110 = vmatprep.subr.bf16.mxu0 %v2298_v42 }
 0x3c8   :  { %2070 = vmatpush1.bf16.msra.mxu1 %v2295_v47  ;;  %2111 = vmatpush1.bf16.msra.mxu0 %v2297_v48  ;;  %v1129_v47 = vsub.s32 7, %v2831_v23  ;;  %v1118_v48 = vrot.slane %v1095_v26, %v1117_v44 }
 0x3c9   :  { %2071 = vmatprep.subr.bf16.mxu1 %v2312_v49  ;;  %2112 = vmatprep.subr.bf16.mxu0 %v2314_v50  ;;  %v1126_v49 = vrot.slane %v1095_v26, %v1125_v45  ;;  %v1122_v50 = vrot.slane %v1095_v26, %v1121_v46 }
 0x3ca   :  { %v1130_v51 = vrot.slane %v1095_v26, %v1129_v47 }
 0x3cc   :  { %2072 = vmatpush1.bf16.msra.mxu1 %v2311_v55  ;;  %2113 = vmatpush1.bf16.msra.mxu0 %v2313_v57 }
 0x3cd   :  { %2073 = vmatprep.subr.bf16.mxu1 %v2328_v58  ;;  %2114 = vmatprep.subr.bf16.mxu0 %v2330_v12 }
 0x3d0   :  { %2074 = vmatpush1.bf16.msra.mxu1 %v2327_v63  ;;  %2115 = vmatpush1.bf16.msra.mxu0 %v2329_v0  ;;  %v1096_v0 = vld [vmem:[%s2904_s9 + $0x8] sm:$0xff] }
 0x3d1   :  { %2075 = vmatprep.subr.bf16.mxu1 %v2344_v1  ;;  %2116 = vmatprep.subr.bf16.mxu0 %v2346_v2  ;;  %v1134_v1 = vrot.slane %v1096_v0, %v1101_v24  ;;  %v1142_v2 = vrot.slane %v1096_v0, %v1109_v25  ;;  %v1138_v3 = vrot.slane %v1096_v0, %v1105_v27 }
 0x3d2   :  { %v1146_v4 = vrot.slane %v1096_v0, %v1113_v28 }
 0x3d4   :  { %2076 = vmatpush1.bf16.msra.mxu1 %v2343_v7  ;;  %2117 = vmatpush1.bf16.msra.mxu0 %v2345_v8 }
 0x3d5   :  { %2077 = vmatprep.subr.bf16.mxu1 %v2360_v9  ;;  %2118 = vmatprep.subr.bf16.mxu0 %v2362_v10 }
 0x3d8   :  { %2078 = vmatpush1.bf16.msra.mxu1 %v2359_v16  ;;  %2119 = vmatpush1.bf16.msra.mxu0 %v2361_v17 }
 0x3d9   :  { %2079 = vmatprep.subr.bf16.mxu1 %v2376_v18  ;;  %2120 = vmatprep.subr.bf16.mxu0 %v2378_v19  ;;  %v1150_v18 = vrot.slane %v1096_v0, %v1117_v44  ;;  %v1158_v19 = vrot.slane %v1096_v0, %v1125_v45 }
 0x3dc   :  { %2080 = vmatpush1.bf16.msra.mxu1 %v2375_v20  ;;  %2121 = vmatpush1.bf16.msra.mxu0 %v2377_v21  ;;  %v1154_v20 = vrot.slane %v1096_v0, %v1121_v46  ;;  %v1162_v21 = vrot.slane %v1096_v0, %v1129_v47 }
 0x3df   :  { %2098 = vmatmul.mubr.bf16.vlgmr.msra.gmra.mrb[24].mxu1 %v2815_v56  ;;  %2139 = vmatmul.mubr.bf16.vlgmr.msra.gmra.mrb[24].mxu0 %v2815_v56 }
 0x452   :  { %v1853_v56 = vpop.f32.mrb[12].mxu1  ;;  %v1894_v33 = vpop.f32.mrb[12].mxu0 }
 0x453   :  { %v1854_v34 = vadd.f32 %v1853_v56, %v1102_v29  ;;  %v1895_v35 = vadd.f32 %v1894_v33, %v1110_v30  ;;  %v1855_v36 = vpop.f32.mrb[13].mxu1  ;;  %v1896_v37 = vpop.f32.mrb[13].mxu0 }
 0x454   :  { %v1856_v38 = vadd.f32 %v1855_v36, %v1106_v31  ;;  %v1897_v39 = vadd.f32 %v1896_v37, %v1114_v32  ;;  %v1857_v40 = vpop.f32.mrb[14].mxu1  ;;  %v1898_v41 = vpop.f32.mrb[14].mxu0 }
 0x455   :  { %2147 = vst [vmem:[%s2906_s11] sm:$0xff] %v1854_v34  ;;  %2149 = vst [vmem:[%s2906_s11 + $0x10] sm:$0xff] %v1895_v35  ;;  %v1858_v42 = vpop.f32.mrb[15].mxu1  ;;  %v1899_v43 = vpop.f32.mrb[15].mxu0 }
 0x456   :  { %2148 = vst [vmem:[%s2906_s11 + $0x8] sm:$0xff] %v1856_v38  ;;  %2150 = vst [vmem:[%s2906_s11 + $0x18] sm:$0xff] %v1897_v39 }
 0x472   :  { %v1935_v52 = vpop.f32.mrb[16].mxu1  ;;  %v1976_v53 = vpop.f32.mrb[16].mxu0 }
 0x473   :  { %v1936_v54 = vadd.f32 %v1935_v52, %v1118_v48  ;;  %v1977_v55 = vadd.f32 %v1976_v53, %v1126_v49  ;;  %v1937_v57 = vpop.f32.mrb[17].mxu1  ;;  %v1978_v58 = vpop.f32.mrb[17].mxu0 }
 0x474   :  { %v1938_v12 = vadd.f32 %v1937_v57, %v1122_v50  ;;  %v1979_v59 = vadd.f32 %v1978_v58, %v1130_v51  ;;  %v1939_v60 = vpop.f32.mrb[18].mxu1  ;;  %v1980_v61 = vpop.f32.mrb[18].mxu0 }
 0x475   :  { %2151 = vst [vmem:[%s2906_s11 + $0x20] sm:$0xff] %v1936_v54  ;;  %2153 = vst [vmem:[%s2906_s11 + $0x30] sm:$0xff] %v1977_v55  ;;  %v1940_v62 = vpop.f32.mrb[19].mxu1  ;;  %v1981_v63 = vpop.f32.mrb[19].mxu0 }
 0x476   :  { %2152 = vst [vmem:[%s2906_s11 + $0x28] sm:$0xff] %v1938_v12  ;;  %2154 = vst [vmem:[%s2906_s11 + $0x38] sm:$0xff] %v1979_v59 }
 0x492   :  { %v2017_v5 = vpop.f32.mrb[20].mxu1  ;;  %v2058_v6 = vpop.f32.mrb[20].mxu0 }
 0x493   :  { %v2018_v7 = vadd.f32 %v2017_v5, %v1134_v1  ;;  %v2059_v8 = vadd.f32 %v2058_v6, %v1142_v2  ;;  %v2019_v9 = vpop.f32.mrb[21].mxu1  ;;  %v2060_v10 = vpop.f32.mrb[21].mxu0 }
 0x494   :  { %v2020_v11 = vadd.f32 %v2019_v9, %v1138_v3  ;;  %v2061_v13 = vadd.f32 %v2060_v10, %v1146_v4  ;;  %v2021_v14 = vpop.f32.mrb[22].mxu1  ;;  %v2062_v15 = vpop.f32.mrb[22].mxu0 }
 0x495   :  { %2155 = vst [vmem:[%s2906_s11 + $0x40] sm:$0xff] %v2018_v7  ;;  %2157 = vst [vmem:[%s2906_s11 + $0x50] sm:$0xff] %v2059_v8  ;;  %v2022_v16 = vpop.f32.mrb[23].mxu1  ;;  %v2063_v17 = vpop.f32.mrb[23].mxu0 }
 0x496   :  { %2156 = vst [vmem:[%s2906_s11 + $0x48] sm:$0xff] %v2020_v11  ;;  %2158 = vst [vmem:[%s2906_s11 + $0x58] sm:$0xff] %v2061_v13 }
 0x4b2   :  { %v2099_v22 = vpop.f32.mrb[24].mxu1  ;;  %v2140_v23 = vpop.f32.mrb[24].mxu0 }
 0x4b3   :  { %v2100_v24 = vadd.f32 %v2099_v22, %v1150_v18  ;;  %v2141_v25 = vadd.f32 %v2140_v23, %v1158_v19  ;;  %v2101_v26 = vpop.f32.mrb[25].mxu1  ;;  %v2142_v27 = vpop.f32.mrb[25].mxu0 }
 0x4b4   :  { %v2102_v28 = vadd.f32 %v2101_v26, %v1154_v20  ;;  %v2143_v29 = vadd.f32 %v2142_v27, %v1162_v21  ;;  %v2103_v30 = vpop.f32.mrb[26].mxu1  ;;  %v2144_v31 = vpop.f32.mrb[26].mxu0 }
 0x4b5   :  { %2159 = vst [vmem:[%s2906_s11 + $0x60] sm:$0xff] %v2100_v24  ;;  %2161 = vst [vmem:[%s2906_s11 + $0x70] sm:$0xff] %v2141_v25  ;;  %v2104_v32 = vpop.f32.mrb[27].mxu1  ;;  %v2145_v56 = vpop.f32.mrb[27].mxu0 }
 0x4b6   :  { %2160 = vst [vmem:[%s2906_s11 + $0x68] sm:$0xff] %v2102_v28  ;;  %2162 = vst [vmem:[%s2906_s11 + $0x78] sm:$0xff] %v2143_v29 }
 0x4b7   :  { %2171 = vsyncpa [#allocation3], 1 }
 0x4b8   :  { %2172 = vsyncpa [#allocation5], 1 }

</bundles_post_ra>
